<compile_context>
chip_gen: v7x
topology: tpu7x:2x2x1
jax: 0.10.0
libtpu: 0.0.40
codegen_flags: <defaults>
</compile_context>

<pallas_src>
import jax
import jax.numpy as jnp
from jax import lax
from jax.experimental import pallas as pl
from jax.experimental.pallas import tpu as pltpu


# ---------------------------------------------------------------------------
# problem sizes (small, consistent with a tiny synthetic "graph")
# ---------------------------------------------------------------------------
N_NODES  = 64     # number of variable nodes in the (single) node store
F_IN     = 8      # raw literal / input feature width
F_PAD    = 128    # padded contraction width for the encoder matmul
HIDDEN   = 128    # hidden feature width (lane-dense)
BIAS_COL = F_IN   # lit_pad column that carries the constant 1.0 (encoder bias fold)


# ---------------------------------------------------------------------------
# fused Pallas kernel: encoder + while_loop(core + decoder) with early break
# ---------------------------------------------------------------------------
def _fused_kernel(lit_ref, w_enc_ref,
                  w1_ref, b1_ref, w2_ref, b2_ref,
                  w_dec_ref, b_dec_ref,
                  loss_ref, solved_ref, nstep_ref,
                  x_ref):
    num_step = loss_ref.shape[0]  # static

    # zero the SMEM outputs once (entries past model_step are truncated on host)
    for i in range(num_step):
        loss_ref[i] = jnp.float32(0.0)
        solved_ref[i] = jnp.int32(0)

    # --- encoder (bias folded into w_enc via the lit ones-column) ----------
    h0 = jnp.dot(lit_ref[...], w_enc_ref[...],
                 preferred_element_type=jnp.float32)
    x_ref[...] = jnp.maximum(h0, 0.0)

    # --- recurrence with in-kernel early break (torch `break`) -------------
    def cond_fn(carry):
        step, done = carry
        return jnp.logical_and(step < num_step, done == 0)

    def body_fn(carry):
        step, _ = carry
        x = x_ref[...]                                            # [N, H] f32
        # core: residual 2-layer MLP update (bf16 MXU operands, f32 accumulation)
        h = jnp.dot(x.astype(jnp.bfloat16), w1_ref[...],
                    preferred_element_type=jnp.float32)
        h = jnp.maximum(h + b1_ref[...], 0.0)
        u = jnp.dot(h.astype(jnp.bfloat16), w2_ref[...],
                    preferred_element_type=jnp.float32)
        x_new = jnp.tanh(u + b2_ref[...]) + x
        x_ref[...] = x_new

        # decoder (fused): per-node logit via lane reduction, not a [128,1] matmul
        logits = jnp.sum(x_new * w_dec_ref[...], axis=-1,
                         keepdims=True) + b_dec_ref[0]            # [N, 1]
        # numerically-stable softplus(-logits)
        sp = jnp.maximum(-logits, 0.0) + jnp.log1p(jnp.exp(-jnp.abs(logits)))
        loss_ref[step] = jnp.mean(sp)
        solved_val = jnp.min(jnp.where(logits > 0.0, 1, 0).astype(jnp.int32))
        solved_ref[step] = solved_val
        return step + 1, solved_val

    final_step, _ = lax.while_loop(cond_fn, body_fn,
                                   (jnp.int32(0), jnp.int32(0)))
    nstep_ref[0] = final_step                                      # model_step


def build_fused_forward(num_step: int):
    grid_spec = pltpu.PrefetchScalarGridSpec(
        num_scalar_prefetch=0,
        grid=(1,),
        in_specs=[
            pl.BlockSpec((N_NODES, F_PAD), lambda s: (0, 0)),    # lit (bf16, bias col)
            pl.BlockSpec((F_PAD, HIDDEN), lambda s: (0, 0)),     # w_enc (bf16, bias row)
            pl.BlockSpec((HIDDEN, HIDDEN), lambda s: (0, 0)),    # w1 (bf16)
            pl.BlockSpec((1, HIDDEN), lambda s: (0, 0)),         # b1 (f32)
            pl.BlockSpec((HIDDEN, HIDDEN), lambda s: (0, 0)),    # w2 (bf16)
            pl.BlockSpec((1, HIDDEN), lambda s: (0, 0)),         # b2 (f32)
            pl.BlockSpec((1, HIDDEN), lambda s: (0, 0)),         # w_dec row (f32)
            pl.BlockSpec(memory_space=pltpu.SMEM),               # b_dec scalar
        ],
        out_specs=(
            pl.BlockSpec(memory_space=pltpu.SMEM),               # losses  [num_step]
            pl.BlockSpec(memory_space=pltpu.SMEM),               # solved  [num_step]
            pl.BlockSpec(memory_space=pltpu.SMEM),               # model_step [1]
        ),
        scratch_shapes=[
            pltpu.VMEM((N_NODES, HIDDEN), jnp.float32),          # resident node state x
        ],
    )
    return pl.pallas_call(
        _fused_kernel,
        out_shape=(jax.ShapeDtypeStruct((num_step,), jnp.float32),
                   jax.ShapeDtypeStruct((num_step,), jnp.int32),
                   jax.ShapeDtypeStruct((1,), jnp.int32)),
        grid_spec=grid_spec,
        compiler_params=pltpu.CompilerParams(
            dimension_semantics=("arbitrary",)),
    )


# ---------------------------------------------------------------------------
# BaseModel equivalent
# ---------------------------------------------------------------------------
class PallasBaseModel:
    name = "Base"

    def __init__(self, key, num_step: int = 8, grad_alpha: float = 0.5,
                 training: bool = True):
        self.num_step = num_step
        self.grad_alpha = grad_alpha
        self.training = training

        k = jax.random.split(key, 4)
        s_enc = 1.0 / jnp.sqrt(F_IN)
        s_hid = 1.0 / jnp.sqrt(HIDDEN)

        # encoder params; K zero-padded 8 -> 128 and the bias folded into row F_IN
        w_enc_raw = jax.random.normal(k[0], (F_IN, HIDDEN), jnp.float32) * s_enc
        b_enc = jnp.zeros((HIDDEN,), jnp.float32)
        w_enc_pad = jnp.zeros((F_PAD, HIDDEN), jnp.float32)
        w_enc_pad = w_enc_pad.at[:F_IN].set(w_enc_raw)
        w_enc_pad = w_enc_pad.at[BIAS_COL].set(b_enc)
        self.w_enc = w_enc_pad.astype(jnp.bfloat16)
        # core params
        self.w1 = (jax.random.normal(k[1], (HIDDEN, HIDDEN), jnp.float32) * s_hid
                   ).astype(jnp.bfloat16)
        self.b1 = jnp.zeros((1, HIDDEN), jnp.float32)
        self.w2 = (jax.random.normal(k[2], (HIDDEN, HIDDEN), jnp.float32) * s_hid
                   ).astype(jnp.bfloat16)
        self.b2 = jnp.zeros((1, HIDDEN), jnp.float32)
        # decoder params (row vector -> lane reduction in-kernel)
        self.w_dec = jax.random.normal(k[3], (1, HIDDEN), jnp.float32) * s_hid
        self.b_dec = jnp.zeros((1,), jnp.float32)

        self._fused = build_fused_forward(num_step)
        # one XLA dispatch: lit padding + fused pallas_call
        self._forward_jit = jax.jit(self._device_forward)

    def _device_forward(self, lit_features):
        # zero-pad the literal features once and add the constant-1.0 bias column
        lit_pad = jnp.zeros((N_NODES, F_PAD), jnp.float32)
        lit_pad = lit_pad.at[:, :F_IN].set(lit_features)
        lit_pad = lit_pad.at[:, BIAS_COL].set(1.0)
        lit_pad = lit_pad.astype(jnp.bfloat16)
        return self._fused(lit_pad, self.w_enc,
                           self.w1, self.b1, self.w2, self.b2,
                           self.w_dec, self.b_dec)

    def __call__(self, lit_features):
        # TODO(synk): the straight-through mix x*alpha + x.detach()*(1-alpha) is the
        # identity in the forward pass; if gradients are ever required it must be
        # expressed as a jax.custom_vjp around this fused kernel.
        losses_arr, solved_i32, nstep = self._forward_jit(lit_features)

        # single host sync at the very end (model_step computed in-kernel)
        nstep_h, solved_h, losses_h = jax.device_get((nstep, solved_i32, losses_arr))
        model_step = int(nstep_h[0])

        losses = jnp.asarray(losses_h[:model_step])
        solveds = jnp.asarray(solved_h[:model_step] > 0)
        return model_step, losses, solveds


# ---------------------------------------------------------------------------
if __name__ == "__main__":
    key = jax.random.PRNGKey(0)
    k_model, k_data = jax.random.split(key)

    model = PallasBaseModel(k_model, num_step=8, grad_alpha=0.5, training=True)
    lit_features = jax.random.normal(k_data, (N_NODES, F_IN), jnp.float32)

    model_step, losses, solveds = model(lit_features)

    jax.block_until_ready(losses)
    jax.block_until_ready(solveds)

    assert 1 <= model_step <= model.num_step
    assert len(losses) == model_step == len(solveds)
    assert bool(jnp.all(jnp.isfinite(losses)))
    print("KERNEL_OK")
</pallas_src>

<mosaic_0001>
module attributes {stable_mosaic.version = 11 : i64} {
  func.func @_fused_kernel(%arg0: i32, %arg1: memref<64x128xbf16, #tpu.memory_space<vmem>>, %arg2: memref<128x128xbf16, #tpu.memory_space<vmem>>, %arg3: memref<128x128xbf16, #tpu.memory_space<vmem>>, %arg4: memref<1x128xf32, #tpu.memory_space<vmem>>, %arg5: memref<128x128xbf16, #tpu.memory_space<vmem>>, %arg6: memref<1x128xf32, #tpu.memory_space<vmem>>, %arg7: memref<1x128xf32, #tpu.memory_space<vmem>>, %arg8: memref<1xf32, #tpu.memory_space<smem>>, %arg9: memref<8xf32, #tpu.memory_space<smem>>, %arg10: memref<8xi32, #tpu.memory_space<smem>>, %arg11: memref<1xi32, #tpu.memory_space<smem>>, %arg12: memref<64x128xf32, #tpu.memory_space<vmem>>) attributes {dimension_semantics = [#tpu.dimension_semantics<arbitrary>], iteration_bounds = array<i64: 1>, scalar_prefetch = 0 : i64, scratch_operands = 1 : i64, tpu.core_type = #tpu.core_type<tc>, window_params = [{pipeline_mode = #tpu.pipeline_mode<synchronous>, transform_indices = @transform_0, window_bounds = array<i64: 64, 128>}, {pipeline_mode = #tpu.pipeline_mode<synchronous>, transform_indices = @transform_1, window_bounds = array<i64: 128, 128>}, {pipeline_mode = #tpu.pipeline_mode<synchronous>, transform_indices = @transform_2, window_bounds = array<i64: 128, 128>}, {pipeline_mode = #tpu.pipeline_mode<synchronous>, transform_indices = @transform_3, window_bounds = array<i64: 1, 128>}, {pipeline_mode = #tpu.pipeline_mode<synchronous>, transform_indices = @transform_4, window_bounds = array<i64: 128, 128>}, {pipeline_mode = #tpu.pipeline_mode<synchronous>, transform_indices = @transform_5, window_bounds = array<i64: 1, 128>}, {pipeline_mode = #tpu.pipeline_mode<synchronous>, transform_indices = @transform_6, window_bounds = array<i64: 1, 128>}, {transform_indices = @transform_7, window_bounds = array<i64: 1>}, {transform_indices = @transform_8, window_bounds = array<i64: 8>}, {transform_indices = @transform_9, window_bounds = array<i64: 8>}, {transform_indices = @transform_10, window_bounds = array<i64: 1>}]} {
    %cst = arith.constant 0.000000e+00 : f32
    %c0 = arith.constant 0 : index
    %0 = memref.load %arg9[%c0] : memref<8xf32, #tpu.memory_space<smem>>
    memref.store %cst, %arg9[%c0] : memref<8xf32, #tpu.memory_space<smem>>
    %c0_i32 = arith.constant 0 : i32
    %c0_0 = arith.constant 0 : index
    %1 = memref.load %arg10[%c0_0] : memref<8xi32, #tpu.memory_space<smem>>
    memref.store %c0_i32, %arg10[%c0_0] : memref<8xi32, #tpu.memory_space<smem>>
    %cst_1 = arith.constant 0.000000e+00 : f32
    %c1 = arith.constant 1 : index
    %2 = memref.load %arg9[%c1] : memref<8xf32, #tpu.memory_space<smem>>
    memref.store %cst_1, %arg9[%c1] : memref<8xf32, #tpu.memory_space<smem>>
    %c0_i32_2 = arith.constant 0 : i32
    %c1_3 = arith.constant 1 : index
    %3 = memref.load %arg10[%c1_3] : memref<8xi32, #tpu.memory_space<smem>>
    memref.store %c0_i32_2, %arg10[%c1_3] : memref<8xi32, #tpu.memory_space<smem>>
    %cst_4 = arith.constant 0.000000e+00 : f32
    %c2 = arith.constant 2 : index
    %4 = memref.load %arg9[%c2] : memref<8xf32, #tpu.memory_space<smem>>
    memref.store %cst_4, %arg9[%c2] : memref<8xf32, #tpu.memory_space<smem>>
    %c0_i32_5 = arith.constant 0 : i32
    %c2_6 = arith.constant 2 : index
    %5 = memref.load %arg10[%c2_6] : memref<8xi32, #tpu.memory_space<smem>>
    memref.store %c0_i32_5, %arg10[%c2_6] : memref<8xi32, #tpu.memory_space<smem>>
    %cst_7 = arith.constant 0.000000e+00 : f32
    %c3 = arith.constant 3 : index
    %6 = memref.load %arg9[%c3] : memref<8xf32, #tpu.memory_space<smem>>
    memref.store %cst_7, %arg9[%c3] : memref<8xf32, #tpu.memory_space<smem>>
    %c0_i32_8 = arith.constant 0 : i32
    %c3_9 = arith.constant 3 : index
    %7 = memref.load %arg10[%c3_9] : memref<8xi32, #tpu.memory_space<smem>>
    memref.store %c0_i32_8, %arg10[%c3_9] : memref<8xi32, #tpu.memory_space<smem>>
    %cst_10 = arith.constant 0.000000e+00 : f32
    %c4 = arith.constant 4 : index
    %8 = memref.load %arg9[%c4] : memref<8xf32, #tpu.memory_space<smem>>
    memref.store %cst_10, %arg9[%c4] : memref<8xf32, #tpu.memory_space<smem>>
    %c0_i32_11 = arith.constant 0 : i32
    %c4_12 = arith.constant 4 : index
    %9 = memref.load %arg10[%c4_12] : memref<8xi32, #tpu.memory_space<smem>>
    memref.store %c0_i32_11, %arg10[%c4_12] : memref<8xi32, #tpu.memory_space<smem>>
    %cst_13 = arith.constant 0.000000e+00 : f32
    %c5 = arith.constant 5 : index
    %10 = memref.load %arg9[%c5] : memref<8xf32, #tpu.memory_space<smem>>
    memref.store %cst_13, %arg9[%c5] : memref<8xf32, #tpu.memory_space<smem>>
    %c0_i32_14 = arith.constant 0 : i32
    %c5_15 = arith.constant 5 : index
    %11 = memref.load %arg10[%c5_15] : memref<8xi32, #tpu.memory_space<smem>>
    memref.store %c0_i32_14, %arg10[%c5_15] : memref<8xi32, #tpu.memory_space<smem>>
    %cst_16 = arith.constant 0.000000e+00 : f32
    %c6 = arith.constant 6 : index
    %12 = memref.load %arg9[%c6] : memref<8xf32, #tpu.memory_space<smem>>
    memref.store %cst_16, %arg9[%c6] : memref<8xf32, #tpu.memory_space<smem>>
    %c0_i32_17 = arith.constant 0 : i32
    %c6_18 = arith.constant 6 : index
    %13 = memref.load %arg10[%c6_18] : memref<8xi32, #tpu.memory_space<smem>>
    memref.store %c0_i32_17, %arg10[%c6_18] : memref<8xi32, #tpu.memory_space<smem>>
    %cst_19 = arith.constant 0.000000e+00 : f32
    %c7 = arith.constant 7 : index
    %14 = memref.load %arg9[%c7] : memref<8xf32, #tpu.memory_space<smem>>
    memref.store %cst_19, %arg9[%c7] : memref<8xf32, #tpu.memory_space<smem>>
    %c0_i32_20 = arith.constant 0 : i32
    %c7_21 = arith.constant 7 : index
    %15 = memref.load %arg10[%c7_21] : memref<8xi32, #tpu.memory_space<smem>>
    memref.store %c0_i32_20, %arg10[%c7_21] : memref<8xi32, #tpu.memory_space<smem>>
    %c0_22 = arith.constant 0 : index
    %c0_23 = arith.constant 0 : index
    %16 = vector.load %arg1[%c0_22, %c0_23] : memref<64x128xbf16, #tpu.memory_space<vmem>>, vector<64x128xbf16>
    %c0_24 = arith.constant 0 : index
    %c0_25 = arith.constant 0 : index
    %17 = vector.load %arg2[%c0_24, %c0_25] : memref<128x128xbf16, #tpu.memory_space<vmem>>, vector<128x128xbf16>
    %cst_26 = arith.constant dense<0.000000e+00> : vector<64x128xf32>
    %18 = tpu.matmul %16, %17, %cst_26 {dimension_numbers = #tpu.dot_dimension_numbers<[1], [0], [0], [1], [0, 0, 1, 1], [], []>} : vector<64x128xbf16>, vector<128x128xbf16>, vector<64x128xf32> -> vector<64x128xf32>
    %cst_27 = arith.constant 0.000000e+00 : f32
    %19 = vector.broadcast %cst_27 : f32 to vector<64x128xf32>
    %20 = arith.maximumf %18, %19 : vector<64x128xf32>
    %c0_28 = arith.constant 0 : index
    %c0_29 = arith.constant 0 : index
    %21 = vector.load %arg12[%c0_28, %c0_29] : memref<64x128xf32, #tpu.memory_space<vmem>>, vector<64x128xf32>
    tpu.vector_store %arg12[%c0_28, %c0_29], %20 {strides = array<i32>} : memref<64x128xf32, #tpu.memory_space<vmem>>, vector<64x128xf32>,
    %c0_i32_30 = arith.constant 0 : i32
    %c0_i32_31 = arith.constant 0 : i32
    %22:2 = scf.while (%arg13 = %c0_i32_30, %arg14 = %c0_i32_31) : (i32, i32) -> (i32, i32) {
      %c8_i32 = arith.constant 8 : i32
      %24 = arith.cmpi slt, %arg13, %c8_i32 : i32
      %c0_i32_33 = arith.constant 0 : i32
      %25 = arith.cmpi eq, %arg14, %c0_i32_33 : i32
      %26 = arith.andi %24, %25 : i1
      scf.condition(%26) %arg13, %arg14 : i32, i32
    } do {
    ^bb0(%arg13: i32, %arg14: i32):
      %c0_33 = arith.constant 0 : index
      %c0_34 = arith.constant 0 : index
      %24 = vector.load %arg12[%c0_33, %c0_34] : memref<64x128xf32, #tpu.memory_space<vmem>>, vector<64x128xf32>
      %25 = arith.truncf %24 : vector<64x128xf32> to vector<64x128xbf16>
      %c0_35 = arith.constant 0 : index
      %c0_36 = arith.constant 0 : index
      %26 = vector.load %arg3[%c0_35, %c0_36] : memref<128x128xbf16, #tpu.memory_space<vmem>>, vector<128x128xbf16>
      %cst_37 = arith.constant dense<0.000000e+00> : vector<64x128xf32>
      %27 = tpu.matmul %25, %26, %cst_37 {dimension_numbers = #tpu.dot_dimension_numbers<[1], [0], [0], [1], [0, 0, 1, 1], [], []>} : vector<64x128xbf16>, vector<128x128xbf16>, vector<64x128xf32> -> vector<64x128xf32>
      %c0_38 = arith.constant 0 : index
      %c0_39 = arith.constant 0 : index
      %28 = vector.load %arg4[%c0_38, %c0_39] : memref<1x128xf32, #tpu.memory_space<vmem>>, vector<1x128xf32>
      %29 = vector.broadcast %28 : vector<1x128xf32> to vector<64x128xf32>
      %30 = arith.addf %27, %29 : vector<64x128xf32>
      %cst_40 = arith.constant 0.000000e+00 : f32
      %31 = vector.broadcast %cst_40 : f32 to vector<64x128xf32>
      %32 = arith.maximumf %30, %31 : vector<64x128xf32>
      %33 = arith.truncf %32 : vector<64x128xf32> to vector<64x128xbf16>
      %c0_41 = arith.constant 0 : index
      %c0_42 = arith.constant 0 : index
      %34 = vector.load %arg5[%c0_41, %c0_42] : memref<128x128xbf16, #tpu.memory_space<vmem>>, vector<128x128xbf16>
      %cst_43 = arith.constant dense<0.000000e+00> : vector<64x128xf32>
      %35 = tpu.matmul %33, %34, %cst_43 {dimension_numbers = #tpu.dot_dimension_numbers<[1], [0], [0], [1], [0, 0, 1, 1], [], []>} : vector<64x128xbf16>, vector<128x128xbf16>, vector<64x128xf32> -> vector<64x128xf32>
      %c0_44 = arith.constant 0 : index
      %c0_45 = arith.constant 0 : index
      %36 = vector.load %arg6[%c0_44, %c0_45] : memref<1x128xf32, #tpu.memory_space<vmem>>, vector<1x128xf32>
      %37 = vector.broadcast %36 : vector<1x128xf32> to vector<64x128xf32>
      %38 = arith.addf %35, %37 : vector<64x128xf32>
      %39 = math.tanh %38 : vector<64x128xf32>
      %40 = arith.addf %39, %24 : vector<64x128xf32>
      %c0_46 = arith.constant 0 : index
      %c0_47 = arith.constant 0 : index
      %41 = vector.load %arg12[%c0_46, %c0_47] : memref<64x128xf32, #tpu.memory_space<vmem>>, vector<64x128xf32>
      tpu.vector_store %arg12[%c0_46, %c0_47], %40 {strides = array<i32>} : memref<64x128xf32, #tpu.memory_space<vmem>>, vector<64x128xf32>,
      %c0_48 = arith.constant 0 : index
      %c0_49 = arith.constant 0 : index
      %42 = vector.load %arg7[%c0_48, %c0_49] : memref<1x128xf32, #tpu.memory_space<vmem>>, vector<1x128xf32>
      %43 = vector.broadcast %42 : vector<1x128xf32> to vector<64x128xf32>
      %44 = arith.mulf %40, %43 : vector<64x128xf32>
      %cst_50 = arith.constant dense<0.000000e+00> : vector<64xf32>
      %45 = vector.multi_reduction <add>, %44, %cst_50 [1] : vector<64x128xf32> to vector<64xf32>
      %46 = vector.shape_cast %45 : vector<64xf32> to vector<64x1xf32>
      %c0_51 = arith.constant 0 : index
      %47 = memref.load %arg8[%c0_51] : memref<1xf32, #tpu.memory_space<smem>>
      %48 = vector.broadcast %47 : f32 to vector<64x1xf32>
      %49 = arith.addf %46, %48 : vector<64x1xf32>
      %cst_52 = arith.constant 0.000000e+00 : f32
      %50 = vector.broadcast %cst_52 : f32 to vector<64x1xf32>
      %51 = arith.subf %50, %49 : vector<64x1xf32>
      %cst_53 = arith.constant 0.000000e+00 : f32
      %52 = vector.broadcast %cst_53 : f32 to vector<64x1xf32>
      %53 = arith.maximumf %51, %52 : vector<64x1xf32>
      %54 = math.absf %49 : vector<64x1xf32>
      %cst_54 = arith.constant 0.000000e+00 : f32
      %55 = vector.broadcast %cst_54 : f32 to vector<64x1xf32>
      %56 = arith.subf %55, %54 : vector<64x1xf32>
      %57 = math.exp %56 : vector<64x1xf32>
      %58 = math.log1p %57 : vector<64x1xf32>
      %59 = arith.addf %53, %58 : vector<64x1xf32>
      %60 = vector.shape_cast %59 : vector<64x1xf32> to vector<1x64x1xf32>
      %cst_55 = arith.constant dense<0.000000e+00> : vector<1xf32>
      %61 = vector.multi_reduction <add>, %60, %cst_55 [1, 2] : vector<1x64x1xf32> to vector<1xf32>
      %62 = vector.shape_cast %61 : vector<1xf32> to vector<1x1x1xf32>
      %63 = vector.extract %62[0, 0, 0] : f32 from vector<1x1x1xf32>
      %cst_56 = arith.constant 6.400000e+01 : f32
      %64 = arith.divf %63, %cst_56 : f32
      %65 = arith.index_cast %arg13 : i32 to index
      %66 = memref.load %arg9[%65] : memref<8xf32, #tpu.memory_space<smem>>
      memref.store %64, %arg9[%65] : memref<8xf32, #tpu.memory_space<smem>>
      %cst_57 = arith.constant 0.000000e+00 : f32
      %67 = vector.broadcast %cst_57 : f32 to vector<64x1xf32>
      %68 = arith.cmpf ogt, %49, %67 : vector<64x1xf32>
      %c1_i32 = arith.constant 1 : i32
      %c0_i32_58 = arith.constant 0 : i32
      %69 = vector.broadcast %c1_i32 : i32 to vector<64x1xi32>
      %70 = vector.broadcast %c0_i32_58 : i32 to vector<64x1xi32>
      %71 = arith.select %68, %69, %70 : vector<64x1xi1>, vector<64x1xi32>
      %72 = vector.shape_cast %71 : vector<64x1xi32> to vector<1x64x1xi32>
      %cst_59 = arith.constant dense<2147483647> : vector<1xi32>
      %73 = vector.multi_reduction <minsi>, %72, %cst_59 [1, 2] : vector<1x64x1xi32> to vector<1xi32>
      %74 = vector.shape_cast %73 : vector<1xi32> to vector<1x1x1xi32>
      %75 = vector.extract %74[0, 0, 0] : i32 from vector<1x1x1xi32>
      %76 = arith.index_cast %arg13 : i32 to index
      %77 = memref.load %arg10[%76] : memref<8xi32, #tpu.memory_space<smem>>
      memref.store %75, %arg10[%76] : memref<8xi32, #tpu.memory_space<smem>>
      %c1_i32_60 = arith.constant 1 : i32
      %78 = arith.addi %arg13, %c1_i32_60 : i32
      scf.yield %78, %75 : i32, i32
    }
    %c0_32 = arith.constant 0 : index
    %23 = memref.load %arg11[%c0_32] : memref<1xi32, #tpu.memory_space<smem>>
    memref.store %22#0, %arg11[%c0_32] : memref<1xi32, #tpu.memory_space<smem>>
    return
  }
  func.func @transform_0(%arg0: i32) -> (i32, i32) {
    %c0_i32 = arith.constant 0 : i32
    %c0_i32_0 = arith.constant 0 : i32
    %c0_i32_1 = arith.constant 0 : i32
    return %c0_i32, %c0_i32_0 : i32, i32
  }
  func.func @transform_1(%arg0: i32) -> (i32, i32) {
    %c0_i32 = arith.constant 0 : i32
    %c0_i32_0 = arith.constant 0 : i32
    %c0_i32_1 = arith.constant 0 : i32
    return %c0_i32, %c0_i32_0 : i32, i32
  }
  func.func @transform_2(%arg0: i32) -> (i32, i32) {
    %c0_i32 = arith.constant 0 : i32
    %c0_i32_0 = arith.constant 0 : i32
    %c0_i32_1 = arith.constant 0 : i32
    return %c0_i32, %c0_i32_0 : i32, i32
  }
  func.func @transform_3(%arg0: i32) -> (i32, i32) {
    %c0_i32 = arith.constant 0 : i32
    %c0_i32_0 = arith.constant 0 : i32
    %c0_i32_1 = arith.constant 0 : i32
    return %c0_i32, %c0_i32_0 : i32, i32
  }
  func.func @transform_4(%arg0: i32) -> (i32, i32) {
    %c0_i32 = arith.constant 0 : i32
    %c0_i32_0 = arith.constant 0 : i32
    %c0_i32_1 = arith.constant 0 : i32
    return %c0_i32, %c0_i32_0 : i32, i32
  }
  func.func @transform_5(%arg0: i32) -> (i32, i32) {
    %c0_i32 = arith.constant 0 : i32
    %c0_i32_0 = arith.constant 0 : i32
    %c0_i32_1 = arith.constant 0 : i32
    return %c0_i32, %c0_i32_0 : i32, i32
  }
  func.func @transform_6(%arg0: i32) -> (i32, i32) {
    %c0_i32 = arith.constant 0 : i32
    %c0_i32_0 = arith.constant 0 : i32
    %c0_i32_1 = arith.constant 0 : i32
    return %c0_i32, %c0_i32_0 : i32, i32
  }
  func.func @transform_7(%arg0: i32) -> i32 {
    %c0_i32 = arith.constant 0 : i32
    %c0_i32_0 = arith.constant 0 : i32
    return %c0_i32 : i32
  }
  func.func @transform_8(%arg0: i32) -> i32 {
    %c0_i32 = arith.constant 0 : i32
    %c0_i32_0 = arith.constant 0 : i32
    return %c0_i32 : i32
  }
  func.func @transform_9(%arg0: i32) -> i32 {
    %c0_i32 = arith.constant 0 : i32
    %c0_i32_0 = arith.constant 0 : i32
    return %c0_i32 : i32
  }
  func.func @transform_10(%arg0: i32) -> i32 {
    %c0_i32 = arith.constant 0 : i32
    %c0_i32_0 = arith.constant 0 : i32
    return %c0_i32 : i32
  }
}

</mosaic_0001>

<bundles_post_ra>
// kernel: _device_forward.1
= control target key start
LH: loop header
LB: loop body
LE: loop exit
PB: predicated region body
PF: predicated region fallthrough
CT: control target
= control target key end

     0   :  { %s1544_s0 = inlined_call_operand.vmem [shape: bf16[64,128], index: 0, kind: input, shape index: {}]   ;;  %s1545_s1 = inlined_call_operand.vmem [shape: bf16[128,128], index: 1, kind: input, shape index: {}]   ;;  %s1546_s2 = inlined_call_operand.vmem [shape: bf16[128,128], index: 2, kind: input, shape index: {}]   ;;  %s1547_s3 = inlined_call_operand.vmem [shape: f32[1,128], index: 3, kind: input, shape index: {}, may-alias: {3,5}]   ;;  %s1548_s4 = inlined_call_operand.vmem [shape: bf16[128,128], index: 4, kind: input, shape index: {}]   ;;  %s1549_s5 = inlined_call_operand.vmem [shape: f32[1,128], index: 5, kind: input, shape index: {}, may-alias: {3,5}]   ;;  %s1550_s6 = inlined_call_operand.vmem [shape: f32[1,128], index: 6, kind: input, shape index: {}]   ;;  %s1551_s7 = inlined_call_operand.<no memory space> [shape: f32[1], index: 7, kind: input, shape index: {}]   ;;  %s1552_s8 = inlined_call_operand.hbm [shape: f32[8], index: 8, kind: output, shape index: {0}]   ;;  %s1553_s9 = inlined_call_operand.hbm [shape: s32[8], index: 9, kind: output, shape index: {1}]   ;;  %s1554_s10 = inlined_call_operand.hbm [shape: s32[1], index: 10, kind: output, shape index: {2}]  }
   0x1   :  { %16 = sst [smem:[#allocation3]] %s1551_s7 }
   0x2   :  { %17 = vsyncpa [#allocation5], 0 }
   0x3   :  { %18 = vsyncpa [#allocation7], 0  ;;  %s1155_s15 = smov 0.0   ;;  %v1037_v0 = vld [vmem:[%s1545_s1] sm:$0xff]   ;;  %s1156_s18 = smov 0   ;;  %v1038_v1 = vld [vmem:[%s1545_s1 + $0x8] sm:$0xff]  }
   0x4   :  { %37 = sst [smem:[#allocation4]] %s1155_s15  ;;  %931 = vmatprep.subr.bf16.mxu0 %v1037_v0  ;;  %1003 = vmatprep.subr.bf16.mxu1 %v1037_v0  ;;  %v1039_v2 = vld [vmem:[%s1545_s1 + $0x10] sm:$0xff]   ;;  %v1040_v3 = vld [vmem:[%s1545_s1 + $0x18] sm:$0xff]   ;;  %v1045_v4 = vld [vmem:[%s1544_s0] sm:$0xff]  }
   0x5   :  { %39 = sst [smem:[#allocation6]] %s1156_s18  ;;  %932 = vmatpush3.bf16.msra.mxu0 %v1037_v0  ;;  %1011 = vmatpush3.bf16.msra.mxu1 %v1037_v0  ;;  %v1046_v5 = vld [vmem:[%s1544_s0 + $0x10] sm:$0xff]   ;;  %v1041_v6 = vld [vmem:[%s1545_s1 + $0x20] sm:$0xff]   ;;  %v1042_v7 = vld [vmem:[%s1545_s1 + $0x28] sm:$0xff]  }
   0x6   :  { %41 = sst [smem:[#allocation4 + $0x1]] %s1155_s15  ;;  %933 = vmatprep.subr.bf16.mxu0 %v1038_v1  ;;  %1004 = vmatprep.subr.bf16.mxu1 %v1038_v1  ;;  %v1043_v8 = vld [vmem:[%s1545_s1 + $0x30] sm:$0xff]   ;;  %v1044_v9 = vld [vmem:[%s1545_s1 + $0x38] sm:$0xff]   ;;  %v1047_v10 = vld [vmem:[%s1544_s0 + $0x8] sm:$0xff]  }
   0x7   :  { %43 = sst [smem:[#allocation6 + $0x1]] %s1156_s18  ;;  %947 = vmatprep.mubr.bf16.mxu0 %v1045_v4  ;;  %951 = vmatprep.mubr.bf16.mxu1 %v1046_v5  ;;  %v1048_v11 = vld [vmem:[%s1544_s0 + $0x18] sm:$0xff]   ;;  %s1271_s0 = smov 0  }
   0x8   :  { %45 = sst [smem:[#allocation4 + $0x2]] %s1155_s15 }
   0x9   :  { %47 = sst [smem:[#allocation6 + $0x2]] %s1156_s18  ;;  %934 = vmatpush3.bf16.msra.mxu0 %v1038_v1  ;;  %1012 = vmatpush3.bf16.msra.mxu1 %v1038_v1 }
   0xa   :  { %49 = sst [smem:[#allocation4 + $0x3]] %s1155_s15  ;;  %935 = vmatprep.subr.bf16.mxu0 %v1039_v2  ;;  %1005 = vmatprep.subr.bf16.mxu1 %v1039_v2 }
   0xb   :  { %51 = sst [smem:[#allocation6 + $0x3]] %s1156_s18 }
   0xc   :  { %53 = sst [smem:[#allocation4 + $0x4]] %s1155_s15 }
   0xd   :  { %55 = sst [smem:[#allocation6 + $0x4]] %s1156_s18  ;;  %936 = vmatpush3.bf16.msra.mxu0 %v1039_v2  ;;  %1013 = vmatpush3.bf16.msra.mxu1 %v1039_v2 }
   0xe   :  { %57 = sst [smem:[#allocation4 + $0x5]] %s1155_s15  ;;  %937 = vmatprep.subr.bf16.mxu0 %v1040_v3  ;;  %1006 = vmatprep.subr.bf16.mxu1 %v1040_v3 }
   0xf   :  { %59 = sst [smem:[#allocation6 + $0x5]] %s1156_s18 }
  0x10   :  { %61 = sst [smem:[#allocation4 + $0x6]] %s1155_s15 }
  0x11   :  { %63 = sst [smem:[#allocation6 + $0x6]] %s1156_s18  ;;  %938 = vmatpush3.bf16.msra.mxu0 %v1040_v3  ;;  %1014 = vmatpush3.bf16.msra.mxu1 %v1040_v3 }
  0x12   :  { %65 = sst [smem:[#allocation4 + $0x7]] %s1155_s15  ;;  %939 = vmatprep.subr.bf16.mxu0 %v1041_v6  ;;  %1007 = vmatprep.subr.bf16.mxu1 %v1041_v6 }
  0x13   :  { %67 = sst [smem:[#allocation6 + $0x7]] %s1156_s18 }
  0x15   :  { %940 = vmatpush3.bf16.msra.mxu0 %v1041_v6  ;;  %1015 = vmatpush3.bf16.msra.mxu1 %v1041_v6 }
  0x16   :  { %941 = vmatprep.subr.bf16.mxu0 %v1042_v7  ;;  %1008 = vmatprep.subr.bf16.mxu1 %v1042_v7 }
  0x19   :  { %942 = vmatpush3.bf16.msra.mxu0 %v1042_v7  ;;  %1016 = vmatpush3.bf16.msra.mxu1 %v1042_v7 }
  0x1a   :  { %943 = vmatprep.subr.bf16.mxu0 %v1043_v8  ;;  %1009 = vmatprep.subr.bf16.mxu1 %v1043_v8 }
  0x1d   :  { %944 = vmatpush3.bf16.msra.mxu0 %v1043_v8  ;;  %1017 = vmatpush3.bf16.msra.mxu1 %v1043_v8 }
  0x1e   :  { %945 = vmatprep.subr.bf16.mxu0 %v1044_v9  ;;  %1010 = vmatprep.subr.bf16.mxu1 %v1044_v9 }
  0x21   :  { %946 = vmatpush3.bf16.msra.mxu0 %v1044_v9  ;;  %1018 = vmatpush3.bf16.msra.mxu1 %v1044_v9 }
  0x24   :  { %948 = vmatmul.mubr.bf16.vlgmr.msra.gmra.mrb[0].mxu0 %v1047_v10  ;;  %952 = vmatmul.mubr.bf16.vlgmr.msra.gmra.mrb[0].mxu1 %v1048_v11 }
  0xf7   :  { %v949_v12 = vpop.f32.mrb[0].mxu0  ;;  %v953_v13 = vpop.f32.mrb[0].mxu1 }
  0xf8   :  { %v231_v14 = vmax.f32 %v949_v12, 0.0  ;;  %v235_v15 = vmax.f32 %v953_v13, 0.0  ;;  %v198_v16 = vpop.f32.mrb[1].mxu0  ;;  %v214_v17 = vpop.f32.mrb[1].mxu1 }
  0xf9   :  { %v229_v18 = vmax.f32 %v198_v16, 0.0  ;;  %v233_v19 = vmax.f32 %v214_v17, 0.0  ;;  %v950_v20 = vpop.f32.mrb[2].mxu0  ;;  %v954_v21 = vpop.f32.mrb[2].mxu1 }
  0xfa   :  { %239 = vst [vmem:[#allocation2 + $0x10] sm:$0xff] %v231_v14  ;;  %243 = vst [vmem:[#allocation2 + $0x30] sm:$0xff] %v235_v15  ;;  %v232_v22 = vmax.f32 %v950_v20, 0.0  ;;  %v236_v23 = vmax.f32 %v954_v21, 0.0  ;;  %v201_v24 = vpop.f32.mrb[3].mxu0  ;;  %v217_v25 = vpop.f32.mrb[3].mxu1 }
  0xfb   :  { %237 = vst [vmem:[#allocation2] sm:$0xff] %v229_v18  ;;  %241 = vst [vmem:[#allocation2 + $0x20] sm:$0xff] %v233_v19  ;;  %v230_v26 = vmax.f32 %v201_v24, 0.0  ;;  %v234_v27 = vmax.f32 %v217_v25, 0.0 }
  0xfc   :  { %240 = vst [vmem:[#allocation2 + $0x18] sm:$0xff] %v232_v22  ;;  %244 = vst [vmem:[#allocation2 + $0x38] sm:$0xff] %v236_v23 }
  0xfd   :  { %238 = vst [vmem:[#allocation2 + $0x8] sm:$0xff] %v230_v26  ;;  %242 = vst [vmem:[#allocation2 + $0x28] sm:$0xff] %v234_v27 }
  0xfe LB: > { %v1049_v28 = vld [vmem:[%s1546_s2] sm:$0xff]   ;;  %v1050_v29 = vld [vmem:[%s1546_s2 + $0x8] sm:$0xff]   ;;  %v1051_v30 = vld [vmem:[%s1546_s2 + $0x10] sm:$0xff]   ;;  %s605_s14 = sld [smem:[#allocation3]]  ;;  %vm743_vm12 = vcmask 7168   ;;  %s1496_s15 = sadd.s32 1, %s1153_s0   ;;  %s1153_s0 = sphi %s1271_s0, %s1561_s0  }
  0xff   : > { %955 = vmatprep.subr.bf16.mxu0 %v1049_v28  ;;  %v1052_v31 = vld [vmem:[%s1546_s2 + $0x18] sm:$0xff]   ;;  %v1053_v35 = vld [vmem:[%s1546_s2 + $0x20] sm:$0xff]   ;;  %v1058_v37 = vld [vmem:[%s1548_s4 + $0x8] sm:$0xff]   ;;  %s813_s19 = scalar_lea.smem [#allocation6], %s1153_s0  ;;  %s771_s1 = scalar_lea.smem [#allocation4], %s1153_s0 }
 0x100   : > { %956 = vmatpush3.bf16.msra.mxu0 %v1049_v28  ;;  %v1057_v36 = vld [vmem:[%s1548_s4] sm:$0xff]   ;;  %v1059_v38 = vld [vmem:[%s1548_s4 + $0x10] sm:$0xff]   ;;  %v1054_v39 = vld [vmem:[%s1546_s2 + $0x28] sm:$0xff]   ;;  %p248_p0 = scmp.lt.s32.totalorder %s1496_s15, 8  ;;  %s1561_s0 = smov %s1496_s15 }
 0x101   : > { %957 = vmatprep.subr.bf16.mxu0 %v1050_v29  ;;  %979 = vmatprep.subr.bf16.mxu1 %v1057_v36  ;;  %v1060_v40 = vld [vmem:[%s1548_s4 + $0x18] sm:$0xff]   ;;  %v1055_v41 = vld [vmem:[%s1546_s2 + $0x30] sm:$0xff]   ;;  %v1061_v42 = vld [vmem:[%s1548_s4 + $0x20] sm:$0xff]  }
 0x102   : > { %v1288_v32 = vld [vmem:[#allocation2] sm:$0xff]  ;;  %980 = vmatpush3.bf16.msra.mxu1 %v1057_v36  ;;  %v1056_v43 = vld [vmem:[%s1546_s2 + $0x38] sm:$0xff]   ;;  %v1321_v44 = vld [vmem:[#allocation2 + $0x10] sm:$0xff] }
 0x103   : > { %981 = vmatprep.subr.bf16.mxu1 %v1058_v37  ;;  %v1323_v45 = vld [vmem:[#allocation2 + $0x18] sm:$0xff]  ;;  %v1062_v46 = vld [vmem:[%s1548_s4 + $0x28] sm:$0xff]   ;;  %v1328_v47 = vld [vmem:[#allocation2 + $0x20] sm:$0xff] }
 0x104   : > { %958 = vmatpush3.bf16.msra.mxu0 %v1050_v29  ;;  %v1290_v33 = vld [vmem:[#allocation2 + $0x8] sm:$0xff]  ;;  %v263_v49 = vpack.c.bf16 %v1323_v45, %v1321_v44  ;;  %v1336_v51 = vld [vmem:[#allocation2 + $0x30] sm:$0xff]  ;;  %v1338_v52 = vld [vmem:[#allocation2 + $0x38] sm:$0xff] }
 0x105   : > { %959 = vmatprep.subr.bf16.mxu0 %v1051_v30  ;;  %v262_v34 = vpack.c.bf16 %v1290_v33, %v1288_v32  ;;  %v1330_v48 = vld [vmem:[#allocation2 + $0x28] sm:$0xff]  ;;  %v265_v53 = vpack.c.bf16 %v1338_v52, %v1336_v51  ;;  %v1063_v54 = vld [vmem:[%s1548_s4 + $0x30] sm:$0xff]   ;;  %v1064_v55 = vld [vmem:[%s1548_s4 + $0x38] sm:$0xff]  }
 0x106   : > { %982 = vmatpush3.bf16.msra.mxu1 %v1058_v37  ;;  %v264_v50 = vpack.c.bf16 %v1330_v48, %v1328_v47  ;;  %v876_v56 = vld [vmem:[%s1547_s3] ss:$0 sm:$0xff] }
 0x107   : > { %971 = vmatprep.mubr.bf16.mxu0 %v262_v34  ;;  %983 = vmatprep.subr.bf16.mxu1 %v1059_v38  ;;  %v885_v21 = vld [vmem:[%s1549_s5] ss:$0 sm:$0xff] }
 0x108   : > { %960 = vmatpush3.bf16.msra.mxu0 %v1051_v30 }
 0x109   : > { %961 = vmatprep.subr.bf16.mxu0 %v1052_v31 }
 0x10a   : > { %984 = vmatpush3.bf16.msra.mxu1 %v1059_v38 }
 0x10b   : > { %985 = vmatprep.subr.bf16.mxu1 %v1060_v40 }
 0x10c   : > { %962 = vmatpush3.bf16.msra.mxu0 %v1052_v31 }
 0x10d   : > { %963 = vmatprep.subr.bf16.mxu0 %v1053_v35 }
 0x10e   : > { %986 = vmatpush3.bf16.msra.mxu1 %v1060_v40 }
 0x10f   : > { %987 = vmatprep.subr.bf16.mxu1 %v1061_v42 }
 0x110   : > { %964 = vmatpush3.bf16.msra.mxu0 %v1053_v35 }
 0x111   : > { %965 = vmatprep.subr.bf16.mxu0 %v1054_v39 }
 0x112   : > { %988 = vmatpush3.bf16.msra.mxu1 %v1061_v42 }
 0x113   : > { %989 = vmatprep.subr.bf16.mxu1 %v1062_v46 }
 0x114   : > { %966 = vmatpush3.bf16.msra.mxu0 %v1054_v39 }
 0x115   : > { %967 = vmatprep.subr.bf16.mxu0 %v1055_v41 }
 0x116   : > { %990 = vmatpush3.bf16.msra.mxu1 %v1062_v46 }
 0x117   : > { %991 = vmatprep.subr.bf16.mxu1 %v1063_v54 }
 0x118   : > { %968 = vmatpush3.bf16.msra.mxu0 %v1055_v41  ;;  %v894_v41 = vld [vmem:[%s1550_s6] ss:$0 sm:$0xff] }
 0x119   : > { %969 = vmatprep.subr.bf16.mxu0 %v1056_v43 }
 0x11a   : > { %992 = vmatpush3.bf16.msra.mxu1 %v1063_v54 }
 0x11b   : > { %993 = vmatprep.subr.bf16.mxu1 %v1064_v55 }
 0x11c   : > { %970 = vmatpush3.bf16.msra.mxu0 %v1056_v43 }
 0x11e   : > { %994 = vmatpush3.bf16.msra.mxu1 %v1064_v55 }
 0x11f   : > { %972 = vmatmul.mubr.bf16.vlgmr.msra.gmra.mrb[0].mxu0 %v263_v49 }
 0x120   : > { %975 = vmatprep.mubr.bf16.mxu0 %v264_v50 }
 0x127   : > { %976 = vmatmul.mubr.bf16.gmra.mrb[4].mxu0 %v265_v53 }
 0x1f2   : > { %v973_v57 = vpop.f32.mrb[0].mxu0 }
 0x1f3   : > { %v380_v58 = vadd.f32 %v973_v57, %v876_v56  ;;  %v371_v59 = vpop.f32.mrb[1].mxu0 }
 0x1f4   : > { %v372_v60 = vadd.f32 %v876_v56, %v371_v59  ;;  %v974_v61 = vpop.f32.mrb[2].mxu0 }
 0x1f5   : > { %v383_v62 = vadd.f32 %v974_v61, %v876_v56  ;;  %v374_v63 = vpop.f32.mrb[3].mxu0  ;;  %v404_v1 = vmax.f32 %v380_v58, 0.0 }
 0x1f6   : > { %v375_v0 = vadd.f32 %v876_v56, %v374_v63  ;;  %v402_v3 = vmax.f32 %v372_v60, 0.0 }
 0x1f7   : > { %v405_v2 = vmax.f32 %v383_v62, 0.0 }
 0x1f8   : > { %v403_v4 = vmax.f32 %v375_v0, 0.0 }
 0x1f9   : > { %v411_v5 = vpack.c.bf16 %v405_v2, %v404_v1  ;;  %v1365_v2 = vstv %s605_s14 }
 0x1fa   : > { %v977_v6 = vpop.f32.mrb[4].mxu0  ;;  %v410_v7 = vpack.c.bf16 %v403_v4, %v402_v3 }
 0x1fb   : > { %v396_v8 = vadd.f32 %v977_v6, %v876_v56  ;;  %v387_v9 = vpop.f32.mrb[5].mxu0 }
 0x1fc   : > { %v388_v10 = vadd.f32 %v876_v56, %v387_v9  ;;  %v978_v11 = vpop.f32.mrb[6].mxu0  ;;  %995 = vmatprep.mubr.bf16.mxu1 %v410_v7 }
 0x1fd   : > { %v408_v12 = vmax.f32 %v396_v8, 0.0  ;;  %v399_v13 = vadd.f32 %v978_v11, %v876_v56  ;;  %v390_v14 = vpop.f32.mrb[7].mxu0  ;;  %996 = vmatmul.mubr.bf16.vlgmr.msra.gmra.mrb[0].mxu1 %v411_v5 }
 0x1fe   : > { %v406_v15 = vmax.f32 %v388_v10, 0.0  ;;  %v391_v16 = vadd.f32 %v876_v56, %v390_v14 }
 0x1ff   : > { %v409_v17 = vmax.f32 %v399_v13, 0.0 }
 0x200   : > { %v407_v18 = vmax.f32 %v391_v16, 0.0 }
 0x201   : > { %v413_v19 = vpack.c.bf16 %v409_v17, %v408_v12 }
 0x202   : > { %v412_v20 = vpack.c.bf16 %v407_v18, %v406_v15 }
 0x204   : > { %999 = vmatprep.mubr.bf16.mxu1 %v412_v20 }
 0x205   : > { %1000 = vmatmul.mubr.bf16.gmra.mrb[4].mxu1 %v413_v19 }
 0x2d0   : > { %v997_v22 = vpop.f32.mrb[0].mxu1 }
 0x2d1   : > { %v528_v23 = vadd.f32 %v997_v22, %v885_v21  ;;  %v519_v24 = vpop.f32.mrb[1].mxu1 }
 0x2d2   : > { %v520_v25 = vadd.f32 %v885_v21, %v519_v24  ;;  %v998_v26 = vpop.f32.mrb[2].mxu1 }
 0x2d3   : > { %1065 = vtanh.f32 %v528_v23  ;;  %v531_v27 = vadd.f32 %v998_v26, %v885_v21  ;;  %v522_v28 = vpop.f32.mrb[3].mxu1 }
 0x2d4   : > { %1067 = vtanh.f32 %v520_v25  ;;  %v523_v29 = vadd.f32 %v885_v21, %v522_v28  ;;  %v1157_v25 = vmov 0  }
 0x2d5   : > { %1069 = vtanh.f32 %v531_v27 }
 0x2d6   : > { %1071 = vtanh.f32 %v523_v29 }
 0x2d8   : > { %v1001_v30 = vpop.f32.mrb[4].mxu1 }
 0x2d9   : > { %v544_v31 = vadd.f32 %v1001_v30, %v885_v21  ;;  %v535_v34 = vpop.f32.mrb[5].mxu1 }
 0x2da   : > { %v536_v35 = vadd.f32 %v885_v21, %v535_v34  ;;  %v1002_v36 = vpop.f32.mrb[6].mxu1 }
 0x2db   : > { %1073 = vtanh.f32 %v544_v31  ;;  %v547_v37 = vadd.f32 %v1002_v36, %v885_v21  ;;  %v538_v38 = vpop.f32.mrb[7].mxu1 }
 0x2dc   : > { %1075 = vtanh.f32 %v536_v35  ;;  %v539_v39 = vadd.f32 %v885_v21, %v538_v38 }
 0x2dd   : > { %v1066_v40 = vpop.eup %1065  ;;  %1077 = vtanh.f32 %v547_v37 }
 0x2de   : > { %v1068_v42 = vpop.eup %1067  ;;  %1079 = vtanh.f32 %v539_v39  ;;  %v560_v43 = vadd.f32 %v1066_v40, %v1321_v44 }
 0x2df   : > { %v1070_v46 = vpop.eup %1069  ;;  %v558_v49 = vadd.f32 %v1068_v42, %v1288_v32 }
 0x2e0   : > { %v1072_v50 = vpop.eup %1071  ;;  %v583_v53 = vmul.f32 %v894_v41, %v560_v43  ;;  %568 = vst [vmem:[#allocation2 + $0x10] sm:$0xff] %v560_v43  ;;  %v561_v54 = vadd.f32 %v1070_v46, %v1323_v45 }
 0x2e1   : > { %v581_v55 = vmul.f32 %v894_v41, %v558_v49  ;;  %566 = vst [vmem:[#allocation2] sm:$0xff] %v558_v49  ;;  %v559_v56 = vadd.f32 %v1072_v50, %v1290_v33 }
 0x2e2   : > { %593 = vadd.xlane.f32.xlu1 %v583_v53  ;;  %569 = vst [vmem:[#allocation2 + $0x18] sm:$0xff] %v561_v54  ;;  %v584_v57 = vmul.f32 %v894_v41, %v561_v54 }
 0x2e3   : > { %589 = vadd.xlane.f32.xlu0 %v581_v55  ;;  %567 = vst [vmem:[#allocation2 + $0x8] sm:$0xff] %v559_v56  ;;  %v582_v59 = vmul.f32 %v894_v41, %v559_v56 }
 0x2e5   : > { %v1074_v58 = vpop.eup %1073 }
 0x2e6   : > { %v1076_v44 = vpop.eup %1075  ;;  %595 = vadd.xlane.f32.xlu1 %v584_v57  ;;  %v564_v32 = vadd.f32 %v1074_v58, %v1336_v51 }
 0x2e7   : > { %v1078_v60 = vpop.eup %1077  ;;  %591 = vadd.xlane.f32.xlu0 %v582_v59  ;;  %v562_v61 = vadd.f32 %v1076_v44, %v1328_v47 }
 0x2e8   : > { %v1080_v45 = vpop.eup %1079  ;;  %572 = vst [vmem:[#allocation2 + $0x30] sm:$0xff] %v564_v32  ;;  %v565_v62 = vadd.f32 %v1078_v60, %v1338_v52  ;;  %v587_v1 = vmul.f32 %v894_v41, %v564_v32 }
 0x2e9   : > { %570 = vst [vmem:[#allocation2 + $0x20] sm:$0xff] %v562_v61  ;;  %v585_v33 = vmul.f32 %v894_v41, %v562_v61  ;;  %v563_v63 = vadd.f32 %v1080_v45, %v1330_v48 }
 0x2ea   : > { %573 = vst [vmem:[#allocation2 + $0x38] sm:$0xff] %v565_v62  ;;  %v588_v51 = vmul.f32 %v894_v41, %v565_v62 }
 0x2eb   : > { %597 = vadd.xlane.f32.xlu0 %v585_v33  ;;  %v586_v0 = vmul.f32 %v894_v41, %v563_v63  ;;  %571 = vst [vmem:[#allocation2 + $0x28] sm:$0xff] %v563_v63 }
 0x2ed   : > { %599 = vadd.xlane.f32.xlu1 %v586_v0 }
 0x2ef   : > { %601 = vadd.xlane.f32.xlu0 %v587_v1 }
 0x2f1   : > { %603 = vadd.xlane.f32.xlu1 %v588_v51 }
 0x36f   : > { %v594_v47 = vpop.xlane.xlu1 %593 }
 0x370   : > { %v1368_v3 = vadd.f32 %v1365_v2, %v594_v47  ;;  %v590_v52 = vpop.xlane.xlu0 %589 }
 0x371   : > { %v1371_v4 = vadd.f32 %v1365_v2, %v590_v52 }
 0x372   : > { %v633_v48 = vand.u32 2147483647, %v1368_v3  ;;  %v617_v49 = vsub.f32 0.0, %v1368_v3  ;;  %vm775_vm7 = vcmp.gt.f32.partialorder %v1368_v3, 0.0 }
 0x373   : > { %v631_v5 = vand.u32 2147483647, %v1371_v4  ;;  %v596_v6 = vpop.xlane.xlu1 %595  ;;  %vm773_vm0 = vcmp.gt.f32.partialorder %v1371_v4, 0.0  ;;  %v615_v53 = vsub.f32 0.0, %v1371_v4  ;;  %v783_v60 = vsel %vm775_vm7, 1, %v1157_v25 }
 0x374   : > { %v641_v7 = vsub.f32 0.0, %v633_v48  ;;  %v1376_v8 = vadd.f32 %v1365_v2, %v596_v6  ;;  %v592_v9 = vpop.xlane.xlu0 %591  ;;  %v781_v26 = vsel %vm773_vm0, 1, %v1157_v25  ;;  %v1422_v32 = vmax.f32 %v617_v49, 0.0 }
 0x375   : > { %v639_v10 = vsub.f32 0.0, %v631_v5  ;;  %v1379_v11 = vadd.f32 %v1365_v2, %v592_v9  ;;  %v623_v62 = vmax.f32 %v615_v53, 0.0 }
 0x376   : > { %v651_v12 = vmul.f32 1.442695, %v641_v7  ;;  %v634_v13 = vand.u32 2147483647, %v1376_v8  ;;  %vm776_vm9 = vcmp.gt.f32.partialorder %v1376_v8, 0.0  ;;  %v618_v5 = vsub.f32 0.0, %v1376_v8 }
 0x377   : > { %v647_v14 = vmul.f32 1.442695, %v639_v10  ;;  %v632_v15 = vand.u32 2147483647, %v1379_v11  ;;  %vm774_vm1 = vcmp.gt.f32.partialorder %v1379_v11, 0.0  ;;  %v616_v33 = vsub.f32 0.0, %v1379_v11 }
 0x378   : > { %1081 = vpow2.f32 %v651_v12  ;;  %v642_v16 = vsub.f32 0.0, %v634_v13  ;;  %v598_v17 = vpop.xlane.xlu0 %597  ;;  %v782_v31 = vsel %vm774_vm1, 1, %v1157_v25  ;;  %v784_v6 = vsel %vm776_vm9, 1, %v1157_v25 }
 0x379   : > { %1083 = vpow2.f32 %v647_v14  ;;  %v640_v18 = vsub.f32 0.0, %v632_v15  ;;  %v1385_v20 = vadd.f32 %v1365_v2, %v598_v17  ;;  %v624_v7 = vmax.f32 %v616_v33, 0.0 }
 0x37a   : > { %v653_v19 = vmul.f32 1.442695, %v642_v16  ;;  %v600_v21 = vpop.xlane.xlu1 %599  ;;  %v626_v33 = vmax.f32 %v618_v5, 0.0 }
 0x37b   : > { %v649_v22 = vmul.f32 1.442695, %v640_v18  ;;  %v1388_v23 = vadd.f32 %v1365_v2, %v600_v21  ;;  %v635_v24 = vand.u32 2147483647, %v1385_v20  ;;  %vm777_vm2 = vcmp.gt.f32.partialorder %v1385_v20, 0.0 }
 0x37c   : > { %1085 = vpow2.f32 %v653_v19  ;;  %v785_v27 = vsel %vm777_vm2, 1, %v1157_v25  ;;  %v602_v29 = vpop.xlane.xlu0 %601 }
 0x37d   : > { %1087 = vpow2.f32 %v649_v22  ;;  %v636_v28 = vand.u32 2147483647, %v1388_v23  ;;  %v643_v30 = vsub.f32 0.0, %v635_v24  ;;  %vm789_vm3 = vcmp.lt.s32.totalorder %v781_v26, %v785_v27 }
 0x37e   : > { %vm778_vm4 = vcmp.gt.f32.partialorder %v1388_v23, 0.0  ;;  %v1398_v34 = vsel %vm789_vm3, %v781_v26, %v785_v27  ;;  %v1402_v38 = vadd.f32 %v1365_v2, %v602_v29  ;;  %v604_v55 = vpop.xlane.xlu1 %603 }
 0x37f   : > { %v644_v35 = vsub.f32 0.0, %v636_v28  ;;  %v786_v36 = vsel %vm778_vm4, 1, %v1157_v25  ;;  %v655_v37 = vmul.f32 1.442695, %v643_v30  ;;  %v1427_v45 = vadd.f32 %v1365_v2, %v604_v55 }
 0x380   : > { %vm791_vm5 = vcmp.lt.s32.totalorder %v782_v31, %v786_v36  ;;  %v637_v42 = vand.u32 2147483647, %v1402_v38  ;;  %vm779_vm8 = vcmp.gt.f32.partialorder %v1402_v38, 0.0 }
 0x381   : > { %v657_v39 = vmul.f32 1.442695, %v644_v35  ;;  %v1404_v40 = vsel %vm791_vm5, %v782_v31, %v786_v36  ;;  %1089 = vpow2.f32 %v655_v37  ;;  %v787_v1 = vsel %vm779_vm8, 1, %v1157_v25 }
 0x382   : > { %v1406_v41 = vpop.eup %1081  ;;  %vm797_vm6 = vcmp.lt.s32.totalorder %v1398_v34, %v1404_v40  ;;  %v645_v54 = vsub.f32 0.0, %v637_v42  ;;  %vm793_vm10 = vcmp.lt.s32.totalorder %v783_v60, %v787_v1  ;;  %v638_v4 = vand.u32 2147483647, %v1427_v45 }
 0x383   : > { %v1084_v43 = vpop.eup %1083  ;;  %v681_v46 = vadd.f32 1.0, %v1406_v41  ;;  %1091 = vpow2.f32 %v657_v39  ;;  %v684_v58 = vmul.f32 -0.5, %v1406_v41  ;;  %v794_v52 = vsel %vm793_vm10, %v783_v60, %v787_v1 }
 0x384   : > { %v663_v50 = vadd.f32 1.0, %v1084_v43  ;;  %v666_v59 = vmul.f32 -0.5, %v1084_v43  ;;  %v659_v63 = vmul.f32 1.442695, %v645_v54  ;;  %v669_v0 = vand.u32 2147483647, %v1084_v43 }
 0x385   : > { %1093 = vlog2.f32 %v681_v46  ;;  %v685_v51 = vadd.f32 1.0, %v684_v58  ;;  %vm780_vm11 = vcmp.gt.f32.partialorder %v1427_v45, 0.0  ;;  %v687_v10 = vand.u32 2147483647, %v1406_v41 }
 0x386   : > { %v1415_v56 = vpop.eup %1085  ;;  %1095 = vlog2.f32 %v663_v50  ;;  %v667_v47 = vadd.f32 1.0, %v666_v59  ;;  %v646_v13 = vsub.f32 0.0, %v638_v4  ;;  %vm1446_vm13 = vcmp.lt.f32.partialorder %v669_v0, 0.0004427343 }
 0x387   : > { %v1417_v57 = vpop.eup %1087  ;;  %v690_v44 = vadd.f32 1.0, %v1415_v56  ;;  %v693_v11 = vmul.f32 -0.5, %v1415_v56  ;;  %v686_v15 = vmul.f32 %v1406_v41, %v685_v51  ;;  %v788_v8 = vsel %vm780_vm11, 1, %v1157_v25 }
 0x388   : > { %v672_v61 = vadd.f32 1.0, %v1417_v57  ;;  %v675_v2 = vmul.f32 -0.5, %v1417_v57  ;;  %v668_v18 = vmul.f32 %v1084_v43, %v667_v47  ;;  %v696_v19 = vand.u32 2147483647, %v1415_v56 }
 0x389   : > { %1097 = vlog2.f32 %v690_v44  ;;  %v661_v26 = vmul.f32 1.442695, %v646_v13  ;;  %vm795_vm14 = vcmp.lt.s32.totalorder %v784_v6, %v788_v8  ;;  %v694_v27 = vadd.f32 1.0, %v693_v11 }
 0x38a   : > { %1099 = vlog2.f32 %v672_v61  ;;  %v676_v21 = vadd.f32 1.0, %v675_v2  ;;  %v678_v28 = vand.u32 2147483647, %v1417_v57  ;;  %v796_v29 = vsel %vm795_vm14, %v784_v6, %v788_v8 }
 0x38b   : > { %1101 = vpow2.f32 %v659_v63  ;;  %v1432_v3 = vpop.eup %1089  ;;  %v798_v25 = vsel %vm797_vm6, %v1398_v34, %v1404_v40  ;;  %vm799_vm15 = vcmp.lt.s32.totalorder %v794_v52, %v796_v29  ;;  %vm1461_vm0 = vcmp.lt.f32.partialorder %v687_v10, 0.0004427343 }
 0x38c   : > { %v699_v9 = vadd.f32 1.0, %v1432_v3  ;;  %v702_v35 = vmul.f32 -0.5, %v1432_v3  ;;  %vm1465_vm1 = vcmp.lt.f32.partialorder %v696_v19, 0.0004427343  ;;  %v677_v41 = vmul.f32 %v1417_v57, %v676_v21 }
 0x38d   : > { %v1437_v48 = vpop.eup %1091  ;;  %v800_v34 = vsel %vm799_vm15, %v794_v52, %v796_v29  ;;  %v695_v50 = vmul.f32 %v1415_v56, %v694_v27  ;;  %vm679_vm3 = vcmp.lt.f32.partialorder %v678_v28, 0.0004427343  ;;  %v705_v60 = vand.u32 2147483647, %v1432_v3 }
 0x38e   : > { %v708_v12 = vadd.f32 1.0, %v1437_v48  ;;  %1103 = vlog2.f32 %v699_v9  ;;  %vm801_vm2 = vcmp.lt.s32.totalorder %v798_v25, %v800_v34  ;;  %v703_v55 = vadd.f32 1.0, %v702_v35 }
 0x38f   : > { %v1094_v14 = vpop.eup %1093  ;;  %v711_v58 = vmul.f32 -0.5, %v1437_v48  ;;  %v1474_v59 = vsel %vm801_vm2, %v798_v25, %v800_v34  ;;  %v619_v56 = vsub.f32 0.0, %v1385_v20  ;;  %v714_v47 = vand.u32 2147483647, %v1437_v48 }
 0x390   : > { %v1096_v17 = vpop.eup %1095  ;;  %1105 = vlog2.f32 %v708_v12  ;;  %v683_v22 = vmul.f32 0.6931472, %v1094_v14  ;;  %v704_v2 = vmul.f32 %v1432_v3, %v703_v55  ;;  %vm706_vm4 = vcmp.lt.f32.partialorder %v705_v60, 0.0004427343 }
 0x391   : > { %v665_v24 = vmul.f32 0.6931472, %v1096_v17  ;;  %1107 = vpow2.f32 %v661_v26  ;;  %v712_v52 = vadd.f32 1.0, %v711_v58  ;;  %v627_v11 = vmax.f32 %v619_v56, 0.0 }
 0x392   : > { %v689_v42 = vsel %vm1461_vm0, %v686_v15, %v683_v22  ;;  %v620_v12 = vsub.f32 0.0, %v1388_v23  ;;  %vm715_vm5 = vcmp.lt.f32.partialorder %v714_v47, 0.0004427343  ;;  %v621_v22 = vsub.f32 0.0, %v1402_v38 }
 0x393   : > { %v1098_v30 = vpop.eup %1097  ;;  %v671_v31 = vsel %vm1446_vm13, %v668_v18, %v665_v24  ;;  %v737_v57 = vadd.f32 %v689_v42, %v1422_v32  ;;  %v713_v14 = vmul.f32 %v1437_v48, %v712_v52 }
 0x394   : > { %v1100_v36 = vpop.eup %1099  ;;  %v692_v43 = vmul.f32 0.6931472, %v1098_v30  ;;  %v735_v49 = vadd.f32 %v671_v31, %v623_v62  ;;  %v628_v21 = vmax.f32 %v620_v12, 0.0  ;;  %v629_v25 = vmax.f32 %v621_v22, 0.0 }
 0x395   : > { %v1102_v40 = vpop.eup %1101  ;;  %v674_v46 = vmul.f32 0.6931472, %v1100_v36  ;;  %v747_v5 = vsel %vm743_vm12, %v737_v57, 0.0  ;;  %v622_v31 = vsub.f32 0.0, %v1427_v45  ;;  %v803_v45 = vrot.slane %v1474_v59, 4 }
 0x396   : > { %v717_v53 = vadd.f32 1.0, %v1102_v40  ;;  %v698_v62 = vsel %vm1465_vm1, %v695_v50, %v692_v43  ;;  %v744_v0 = vsel %vm743_vm12, %v735_v49, 0.0  ;;  %v720_v4 = vmul.f32 -0.5, %v1102_v40 }
 0x397   : > { %v680_v54 = vsel %vm679_vm3, %v677_v41, %v674_v46  ;;  %v738_v6 = vadd.f32 %v698_v62, %v626_v33  ;;  %v723_v8 = vand.u32 2147483647, %v1102_v40  ;;  %vm804_vm8 = vcmp.lt.s32.totalorder %v1474_v59, %v803_v45 }
 0x398   : > { %v736_v44 = vadd.f32 %v680_v54, %v624_v7  ;;  %1109 = vlog2.f32 %v717_v53  ;;  %v1104_v61 = vpop.eup %1103  ;;  %v721_v15 = vadd.f32 1.0, %v720_v4  ;;  %v805_v54 = vsel %vm804_vm8, %v1474_v59, %v803_v45 }
 0x399   : > { %v701_v51 = vmul.f32 0.6931472, %v1104_v61  ;;  %v749_v3 = vsel %vm743_vm12, %v738_v6, 0.0  ;;  %vm724_vm6 = vcmp.lt.f32.partialorder %v723_v8, 0.0004427343  ;;  %v806_v55 = vrot.slane %v805_v54, 2 }
 0x39a   : > { %v1106_v63 = vpop.eup %1105  ;;  %v745_v1 = vsel %vm743_vm12, %v736_v44, 0.0  ;;  %v722_v26 = vmul.f32 %v1102_v40, %v721_v15  ;;  %v630_v40 = vmax.f32 %v622_v31, 0.0 }
 0x39b   : > { %v746_v32 = vadd.f32 %v745_v1, %v744_v0  ;;  %v1108_v7 = vpop.eup %1107  ;;  %v707_v9 = vsel %vm706_vm4, %v704_v2, %v701_v51  ;;  %v710_v20 = vmul.f32 0.6931472, %v1106_v63  ;;  %vm807_vm9 = vcmp.lt.s32.totalorder %v805_v54, %v806_v55 }
 0x39c   : > { %v726_v13 = vadd.f32 1.0, %v1108_v7  ;;  %v739_v16 = vadd.f32 %v707_v9, %v627_v11  ;;  %v729_v27 = vmul.f32 -0.5, %v1108_v7  ;;  %v732_v35 = vand.u32 2147483647, %v1108_v7 }
 0x39d   : > { %v748_v10 = vadd.f32 %v747_v5, %v746_v32  ;;  %v716_v17 = vsel %vm715_vm5, %v713_v14, %v710_v20  ;;  %v808_v60 = vsel %vm807_vm9, %v805_v54, %v806_v55 }
 0x39e   : > { %1111 = vlog2.f32 %v726_v13  ;;  %v740_v23 = vadd.f32 %v716_v17, %v628_v21  ;;  %v751_v48 = vsel %vm743_vm12, %v739_v16, 0.0  ;;  %v730_v30 = vadd.f32 1.0, %v729_v27 }
 0x39f   : > { %v750_v18 = vadd.f32 %v749_v3, %v748_v10  ;;  %vm733_vm7 = vcmp.lt.f32.partialorder %v732_v35, 0.0004427343  ;;  %v809_v33 = vrot.slane %v808_v60, 1 }
 0x3a0   : > { %v753_v37 = vsel %vm743_vm12, %v740_v23, 0.0  ;;  %v731_v34 = vmul.f32 %v1108_v7, %v730_v30 }
 0x3a1   : > { %v752_v29 = vadd.f32 %v751_v48, %v750_v18  ;;  %vm810_vm10 = vcmp.lt.s32.totalorder %v808_v60, %v809_v33 }
 0x3a2   : > { %v1110_v19 = vpop.eup %1109  ;;  %v811_v0 = vsel %vm810_vm10, %v808_v60, %v809_v33 }
 0x3a3   : > { %v719_v24 = vmul.f32 0.6931472, %v1110_v19  ;;  %v754_v39 = vadd.f32 %v753_v37, %v752_v29 }
 0x3a5   : > { %v725_v28 = vsel %vm724_vm6, %v722_v26, %v719_v24 }
 0x3a6   : > { %v741_v36 = vadd.f32 %v725_v28, %v629_v25 }
 0x3a8   : > { %v1112_v38 = vpop.eup %1111  ;;  %v755_v42 = vsel %vm743_vm12, %v741_v36, 0.0 }
 0x3a9   : > { %v728_v41 = vmul.f32 0.6931472, %v1112_v38  ;;  %v756_v46 = vadd.f32 %v755_v42, %v754_v39 }
 0x3ab   : > { %v734_v43 = vsel %vm733_vm7, %v731_v34, %v728_v41 }
 0x3ac   : > { %v742_v49 = vadd.f32 %v734_v43, %v630_v40 }
 0x3ae   : > { %v757_v50 = vsel %vm743_vm12, %v742_v49, 0.0 }
 0x3af   : > { %v758_v53 = vadd.f32 %v757_v50, %v756_v46 }
 0x3b1   : > { %759 = vadd.xlane.f32.xlu0 %v758_v53 }
 0x43e   : > { %v760_v58 = vpop.xlane.xlu0 %759 }
 0x43f   : > { %v761_v57 = vrot.slane %v760_v58, 4 }
 0x441   : > { %v762_v44 = vadd.f32 %v761_v57, %v760_v58 }
 0x443   : > { %v763_v61 = vrot.slane %v762_v44, 2 }
 0x445   : > { %v764_v62 = vadd.f32 %v763_v61, %v762_v44 }
 0x447   : > { %v765_v56 = vrot.slane %v764_v62, 1 }
 0x449   : > { %v766_v63 = vadd.f32 %v765_v56, %v764_v62 }
 0x44b   : > { %1019 = vpush %v766_v63 }
 0x44c   : > { %1021 = vpush %v811_v0 }
 0x47c   : > { %s1020_s16 = spop %1019 }
 0x47d   : > { %s770_s17 = smul.f32 0.015625, %s1020_s16  ;;  %s1022_s18 = spop %1021 }
 0x47e   : > { %814 = sst [smem:[%s813_s19]] %s1022_s18  ;;  %p249_p1 = scmp.eq.s32.totalorder %s1022_s18, 0 }
 0x47f   : > { %772 = sst [smem:[%s771_s1]] %s770_s17 }
 0x480   : > { %p250_p2 = pnand %p249_p1, %p248_p0 }
 0x481   :  { %s1113_s21 = scalar_lea.hbm (%p250_p2), %s1553_s9, 16 }
 0x482   :  { %253 = sbr.rel (!%p250_p2) target bundleno = 254 (0xfe), region = 94  ;;  %p1114_p3 = scmp.ne.s32.totalorder (%p250_p2), %s1553_s9, %s1113_s21 }
 0x483   :  { %p1117_p4 = scmp.lt.u32.totalorder (%p250_p2), %s1113_s21, %s1553_s9 }
 0x485   :  { %p1119_p5 = pnand (%p250_p2), %p1117_p4, %p1114_p3 }
 0x489   :  { %1122 = shalt.err (!%p1119_p5)
}
 0x48a   :  { %s1158_s0 = smov [#allocation6]   ;;  %s1123_s3 = scalar_lea.hbm %s1552_s8, 16 }
 0x48b   :  { %833 = dma.smem_to_hbm %s1158_s0, 16, %s1553_s9, [#allocation7]  }
 0x48c   :  { %p1124_p6 = scmp.ne.s32.totalorder %s1552_s8, %s1123_s3  ;;  %p1127_p7 = scmp.lt.u32.totalorder %s1123_s3, %s1552_s8 }
 0x48e   :  { %p1129_p8 = pnand %p1127_p7, %p1124_p6 }
 0x490   :  { %1132 = shalt.err (!%p1129_p8)
}
 0x491   :  { %s1159_s30 = smov [#allocation4]   ;;  %817 = sst [smem:[#allocation8]] %s1496_s15 }
 0x492   :  { %825 = dma.smem_to_hbm %s1159_s30, 16, %s1552_s8, [#allocation5]  }
 0x493   :  { %s1133_s14 = scalar_lea.hbm %s1554_s10, 16 }
 0x494   :  { %p1134_p9 = scmp.ne.s32.totalorder %s1554_s10, %s1133_s14  ;;  %p1137_p10 = scmp.lt.u32.totalorder %s1133_s14, %s1554_s10 }
 0x496   :  { %p1139_p11 = pnand %p1137_p10, %p1134_p9 }
 0x498   :  { %1142 = shalt.err (!%p1139_p11)
}
 0x499   :  { %s1160_s1 = smov [#allocation8]  }
 0x49a   :  { %841 = dma.smem_to_hbm %s1160_s1, 16, %s1554_s10, [#allocation7]  }
 0x49b   :  { %1147 = dma.done.wait [#allocation5], 16  }
 0x49c   :  { %1148 = vsyncadd [#allocation5], 4294967280 }
 0x49d   :  { %1149 = dma.done.wait [#allocation7], 32  }
 0x49e   :  { %1150 = vsyncadd [#allocation7], 4294967264 }
 0x49f   :  { %851 = sfence }
 0x4a0   :  { %852 = vsyncpa [#allocation5], 1 }
 0x4a1   :  { %853 = vsyncpa [#allocation7], 1 }

</bundles_post_ra>
